<compile_context>
chip_gen: v7x
topology: tpu7x:2x2x1
jax: 0.10.0
libtpu: 0.0.40
codegen_flags: <defaults>
</compile_context>

<pallas_src>
import jax
import jax.numpy as jnp
import numpy as np
from jax.experimental import pallas as pl
from jax.experimental.pallas import tpu as pltpu

_NEG_INF = -1e30  # large finite negative -> exp underflows to 0, no inf arithmetic


# --------------------------- fused Pallas kernel ---------------------------
def _gat_fused_kernel(x_ref, pack1_ref, pack2_ref, out_ref):
    """Full GAT forward (all heads + out_att + ELUs) for one batch element.

    x_ref:     [1, N, D]   node features of this batch element
    pack1_ref: [D, 3H]     (W_all | A1r | A1a), A1* lane-replicated per head
    pack2_ref: [H, 3O]     (W2 | A2r | A2a),    A2* lane-replicated
    out_ref:   [1, N, O]
    """
    H = pack1_ref.shape[1] // 3
    O = pack2_ref.shape[1] // 3

    def attention_weights(robot_logits, agent_logits):
        # robot_logits / agent_logits: [N, L]; only row 0 of robot_logits is used.
        node = jax.lax.broadcasted_iota(jnp.int32, agent_logits.shape, 0)
        logits = robot_logits[0:1, :] + agent_logits               # [N, L]
        logits = jnp.where(node == 0, _NEG_INF, logits)            # mask robot row
        m = jnp.max(logits, axis=0, keepdims=True)
        e = jnp.exp(logits - m)                                    # robot row -> 0
        denom = jnp.maximum(jnp.sum(e, axis=0, keepdims=True), 1e-30)  # NaN guard
        attn = e * pl.reciprocal(denom, approx=False)              # exact recip (tolerance)
        # robot row keeps its projected state unscaled -> combine weight 1.0
        return jnp.where(node == 0, 1.0, attn)

    def elu(v):
        return jnp.where(v > 0.0, v, jnp.exp(jnp.minimum(v, 0.0)) - 1.0)

    x = x_ref[0]                                                   # [N, D]

    # ---- stage 1: all heads in ONE matmul against the packed [D, 3H] RHS ----
    y1 = jnp.dot(x, pack1_ref[...], preferred_element_type=jnp.float32)   # [N, 3H] f32
    wh1 = y1[:, :H]                                                # projected features
    r1 = y1[:, H:2 * H]                                            # robot logits (lane-rep)
    a1 = y1[:, 2 * H:]                                             # agent logits (lane-rep)
    h1 = elu(attention_weights(r1, a1) * wh1)                      # concat of ELU'd heads

    # ---- stage 2: out_att (concat=False) + outer F.elu, ONE matmul ----
    y2 = jnp.dot(h1.astype(pack2_ref.dtype), pack2_ref[...],
                 preferred_element_type=jnp.float32)               # [N, 3O] f32
    wh2 = y2[:, :O]
    r2 = y2[:, O:2 * O]
    a2 = y2[:, 2 * O:]
    out_ref[0] = elu(attention_weights(r2, a2) * wh2).astype(out_ref.dtype)


def gat_forward_fused(x, fp):
    """Batched pallas_call: grid over B, packed weights resident in VMEM."""
    B, N, D = x.shape
    pack1 = fp["pack1"]                                            # [D, 3H]
    pack2 = fp["pack2"]                                            # [H, 3O]
    H3 = pack1.shape[1]
    H = H3 // 3
    O3 = pack2.shape[1]
    O = O3 // 3
    x = x.astype(pack1.dtype)                                      # bf16 or f32 MXU input

    return pl.pallas_call(
        _gat_fused_kernel,
        out_shape=jax.ShapeDtypeStruct((B, N, O), jnp.float32),
        grid=(B,),
        in_specs=[
            pl.BlockSpec((1, N, D), lambda b: (b, 0, 0)),          # per-batch node tile
            pl.BlockSpec((D, H3), lambda b: (0, 0)),               # weights: constant block
            pl.BlockSpec((H, O3), lambda b: (0, 0)),               # weights: constant block
        ],
        out_specs=pl.BlockSpec((1, N, O), lambda b: (b, 0, 0)),
        compiler_params=pltpu.CompilerParams(
            dimension_semantics=("parallel",)),                    # shards over TCs on v7x
    )(x, pack1, pack2)
    # TODO(synk): output is lane-sparse (O=16 of 128 lanes); worth a lane-dense repack
    # only once the batch is large enough that the store path becomes visible.


# --------------------------- parameter handling ---------------------------
def xavier_uniform(key, shape, gain):
    fan_in, fan_out = shape
    bound = gain * (6.0 / (fan_in + fan_out)) ** 0.5
    return jax.random.uniform(key, shape, jnp.float32, -bound, bound)


def init_gat_params(key, num_feat, num_hidden_feat, num_out_feat, nheads):
    """Same parameterization as the PyTorch module: per-head (W [D,O], a [2O,1])."""
    gain = 1.414
    heads = []
    for _ in range(nheads):
        key, k1, k2 = jax.random.split(key, 3)
        W = xavier_uniform(k1, (num_feat, num_hidden_feat), gain)
        a = xavier_uniform(k2, (2 * num_hidden_feat, 1), gain)
        heads.append((W, a))
    key, k1, k2 = jax.random.split(key, 3)
    out_W = xavier_uniform(k1, (num_hidden_feat * nheads, num_out_feat), gain)
    out_a = xavier_uniform(k2, (2 * num_out_feat, 1), gain)
    return {"heads": heads, "out_W": out_W, "out_a": out_a}


def prepare_fused_params(params, dtype=jnp.float32):
    """Fold attention vectors into lane-replicated columns and pack per-stage RHS."""
    heads = params["heads"]
    hid = heads[0][0].shape[1]                                     # hidden per head
    W_all = jnp.concatenate([W for W, _ in heads], axis=1)         # [D, H]
    A1r = jnp.concatenate(
        [jnp.tile(W @ a[:hid], (1, hid)) for W, a in heads], axis=1)   # [D, H]
    A1a = jnp.concatenate(
        [jnp.tile(W @ a[hid:], (1, hid)) for W, a in heads], axis=1)   # [D, H]
    pack1 = jnp.concatenate([W_all, A1r, A1a], axis=1)             # [D, 3H]

    W2 = params["out_W"]                                           # [H, O]
    a2 = params["out_a"]                                           # [2O, 1]
    O = W2.shape[1]
    A2r = jnp.tile(W2 @ a2[:O], (1, O))                            # [H, O]
    A2a = jnp.tile(W2 @ a2[O:], (1, O))                            # [H, O]
    pack2 = jnp.concatenate([W2, A2r, A2a], axis=1)                # [H, 3O]

    return {"pack1": pack1.astype(dtype), "pack2": pack2.astype(dtype)}


# ---------------- pure-JAX reference (faithful to the PyTorch module) ----------------
def _ref_layer(h, W, a, apply_elu):
    O = W.shape[1]
    Wh = jnp.einsum("bnd,do->bno", h, W)
    robot = Wh[:, 0, :]
    other = Wh[:, 1:, :]
    logits = (robot @ a[:O, 0])[:, None] + jnp.einsum("bno,o->bn", other, a[O:, 0])
    attn = jax.nn.softmax(logits, axis=1)
    h_prime = attn[:, :, None] * other
    out = jnp.concatenate([robot[:, None, :], h_prime], axis=1)
    return jax.nn.elu(out) if apply_elu else out


def _ref_gat(x, params):
    outs = [_ref_layer(x, W, a, True) for W, a in params["heads"]]
    x_cat = jnp.concatenate(outs, axis=-1)
    return jax.nn.elu(_ref_layer(x_cat, params["out_W"], params["out_a"], False))


if __name__ == "__main__":
    # Shapes implied by the module: B=2 envs, N = 1 robot + 5 other agents = 6
    B, N = 2, 6
    num_feat, num_hidden_feat, num_out_feat, nheads = 16, 32, 16, 4

    key = jax.random.PRNGKey(0)
    key, kx = jax.random.split(key)
    x = jax.random.normal(kx, (B, N, num_feat), dtype=jnp.float32)

    params = init_gat_params(key, num_feat, num_hidden_feat, num_out_feat, nheads)
    ref = jax.block_until_ready(_ref_gat(x, params))

    # f32 operand path (v5e-friendly, tight tolerance vs. the reference)
    fused_f32 = prepare_fused_params(params, dtype=jnp.float32)
    out_f32 = jax.block_until_ready(gat_forward_fused(x, fused_f32))
    assert out_f32.shape == (B, N, num_out_feat)
    np.testing.assert_allclose(np.asarray(out_f32), np.asarray(ref),
                               rtol=1e-4, atol=1e-5)

    # bf16 MXU operand path (v6e/v7x win: ~2x MXU rate, half the weight traffic);
    # accumulation + all elementwise math stays f32 inside the kernel.
    fused_bf16 = prepare_fused_params(params, dtype=jnp.bfloat16)
    out_bf16 = jax.block_until_ready(gat_forward_fused(x, fused_bf16))
    np.testing.assert_allclose(np.asarray(out_bf16), np.asarray(ref),
                               rtol=1e-1, atol=1e-1)

    # TODO(synk): the module's self.attention_weights host-side numpy caching and the
    # unused LeakyReLU(alpha) have no kernel equivalent (not part of the forward math).
    print("KERNEL_OK")
</pallas_src>

<mosaic_0001>
module attributes {stable_mosaic.version = 11 : i64} {
  func.func @_gat_fused_kernel(%arg0: i32, %arg1: memref<1x6x16xf32, #tpu.memory_space<vmem>>, %arg2: memref<16x384xf32, #tpu.memory_space<vmem>>, %arg3: memref<128x48xf32, #tpu.memory_space<vmem>>, %arg4: memref<1x6x16xf32, #tpu.memory_space<vmem>>) attributes {dimension_semantics = [#tpu.dimension_semantics<parallel>], iteration_bounds = array<i64: 2>, scalar_prefetch = 0 : i64, scratch_operands = 0 : i64, tpu.core_type = #tpu.core_type<tc>, window_params = [{transform_indices = @transform_0, window_bounds = array<i64: 1, 6, 16>}, {pipeline_mode = #tpu.pipeline_mode<synchronous>, transform_indices = @transform_1, window_bounds = array<i64: 16, 384>}, {pipeline_mode = #tpu.pipeline_mode<synchronous>, transform_indices = @transform_2, window_bounds = array<i64: 128, 48>}, {transform_indices = @transform_3, window_bounds = array<i64: 1, 6, 16>}]} {
    %c0 = arith.constant 0 : index
    %c0_0 = arith.constant 0 : index
    %c0_1 = arith.constant 0 : index
    %0 = vector.load %arg1[%c0, %c0_0, %c0_1] : memref<1x6x16xf32, #tpu.memory_space<vmem>>, vector<1x6x16xf32>
    %1 = vector.shape_cast %0 : vector<1x6x16xf32> to vector<6x16xf32>
    %c0_2 = arith.constant 0 : index
    %c0_3 = arith.constant 0 : index
    %2 = vector.load %arg2[%c0_2, %c0_3] : memref<16x384xf32, #tpu.memory_space<vmem>>, vector<16x384xf32>
    %cst = arith.constant dense<0.000000e+00> : vector<6x384xf32>
    %3 = tpu.matmul %1, %2, %cst {dimension_numbers = #tpu.dot_dimension_numbers<[1], [0], [0], [1], [0, 0, 1, 1], [], []>} : vector<6x16xf32>, vector<16x384xf32>, vector<6x384xf32> -> vector<6x384xf32>
    %4 = vector.extract_strided_slice %3 {offsets = [0, 0], sizes = [6, 128], strides = [1, 1]} : vector<6x384xf32> to vector<6x128xf32>
    %5 = vector.extract_strided_slice %3 {offsets = [0, 128], sizes = [6, 128], strides = [1, 1]} : vector<6x384xf32> to vector<6x128xf32>
    %6 = vector.extract_strided_slice %3 {offsets = [0, 256], sizes = [6, 128], strides = [1, 1]} : vector<6x384xf32> to vector<6x128xf32>
    %7 = tpu.iota {dimensions = array<i32: 0>} : vector<6x128xi32>
    %8 = vector.extract_strided_slice %5 {offsets = [0, 0], sizes = [1, 128], strides = [1, 1]} : vector<6x128xf32> to vector<1x128xf32>
    %9 = vector.broadcast %8 : vector<1x128xf32> to vector<6x128xf32>
    %10 = arith.addf %9, %6 : vector<6x128xf32>
    %c0_i32 = arith.constant 0 : i32
    %11 = vector.broadcast %c0_i32 : i32 to vector<6x128xi32>
    %12 = arith.cmpi eq, %7, %11 : vector<6x128xi32>
    %cst_4 = arith.constant -1.000000e+30 : f32
    %13 = vector.broadcast %cst_4 : f32 to vector<6x128xf32>
    %14 = arith.select %12, %13, %10 : vector<6x128xi1>, vector<6x128xf32>
    %cst_5 = arith.constant dense<0xFF800000> : vector<128xf32>
    %15 = vector.multi_reduction <maximumf>, %14, %cst_5 [0] : vector<6x128xf32> to vector<128xf32>
    %16 = vector.shape_cast %15 : vector<128xf32> to vector<1x128xf32>
    %17 = vector.broadcast %16 : vector<1x128xf32> to vector<6x128xf32>
    %18 = arith.subf %14, %17 : vector<6x128xf32>
    %19 = math.exp %18 : vector<6x128xf32>
    %cst_6 = arith.constant dense<0.000000e+00> : vector<128xf32>
    %20 = vector.multi_reduction <add>, %19, %cst_6 [0] : vector<6x128xf32> to vector<128xf32>
    %21 = vector.shape_cast %20 : vector<128xf32> to vector<1x128xf32>
    %cst_7 = arith.constant 1.000000e-30 : f32
    %22 = vector.broadcast %cst_7 : f32 to vector<1x128xf32>
    %23 = arith.maximumf %21, %22 : vector<1x128xf32>
    %24 = tpu.reciprocal %23 : vector<1x128xf32> -> vector<1x128xf32>
    %25 = vector.broadcast %24 : vector<1x128xf32> to vector<6x128xf32>
    %26 = arith.mulf %19, %25 : vector<6x128xf32>
    %c0_i32_8 = arith.constant 0 : i32
    %27 = vector.broadcast %c0_i32_8 : i32 to vector<6x128xi32>
    %28 = arith.cmpi eq, %7, %27 : vector<6x128xi32>
    %cst_9 = arith.constant 1.000000e+00 : f32
    %29 = vector.broadcast %cst_9 : f32 to vector<6x128xf32>
    %30 = arith.select %28, %29, %26 : vector<6x128xi1>, vector<6x128xf32>
    %31 = arith.mulf %30, %4 : vector<6x128xf32>
    %cst_10 = arith.constant 0.000000e+00 : f32
    %32 = vector.broadcast %cst_10 : f32 to vector<6x128xf32>
    %33 = arith.cmpf ogt, %31, %32 : vector<6x128xf32>
    %cst_11 = arith.constant 0.000000e+00 : f32
    %34 = vector.broadcast %cst_11 : f32 to vector<6x128xf32>
    %35 = arith.minimumf %31, %34 : vector<6x128xf32>
    %36 = math.exp %35 : vector<6x128xf32>
    %cst_12 = arith.constant 1.000000e+00 : f32
    %37 = vector.broadcast %cst_12 : f32 to vector<6x128xf32>
    %38 = arith.subf %36, %37 : vector<6x128xf32>
    %39 = arith.select %33, %31, %38 : vector<6x128xi1>, vector<6x128xf32>
    %c0_13 = arith.constant 0 : index
    %c0_14 = arith.constant 0 : index
    %40 = vector.load %arg3[%c0_13, %c0_14] : memref<128x48xf32, #tpu.memory_space<vmem>>, vector<128x48xf32>
    %cst_15 = arith.constant dense<0.000000e+00> : vector<6x48xf32>
    %41 = tpu.matmul %39, %40, %cst_15 {dimension_numbers = #tpu.dot_dimension_numbers<[1], [0], [0], [1], [0, 0, 1, 1], [], []>} : vector<6x128xf32>, vector<128x48xf32>, vector<6x48xf32> -> vector<6x48xf32>
    %42 = vector.extract_strided_slice %41 {offsets = [0, 0], sizes = [6, 16], strides = [1, 1]} : vector<6x48xf32> to vector<6x16xf32>
    %43 = vector.extract_strided_slice %41 {offsets = [0, 16], sizes = [6, 16], strides = [1, 1]} : vector<6x48xf32> to vector<6x16xf32>
    %44 = vector.extract_strided_slice %41 {offsets = [0, 32], sizes = [6, 16], strides = [1, 1]} : vector<6x48xf32> to vector<6x16xf32>
    %45 = tpu.iota {dimensions = array<i32: 0>} : vector<6x16xi32>
    %46 = vector.extract_strided_slice %43 {offsets = [0, 0], sizes = [1, 16], strides = [1, 1]} : vector<6x16xf32> to vector<1x16xf32>
    %47 = vector.broadcast %46 : vector<1x16xf32> to vector<6x16xf32>
    %48 = arith.addf %47, %44 : vector<6x16xf32>
    %c0_i32_16 = arith.constant 0 : i32
    %49 = vector.broadcast %c0_i32_16 : i32 to vector<6x16xi32>
    %50 = arith.cmpi eq, %45, %49 : vector<6x16xi32>
    %cst_17 = arith.constant -1.000000e+30 : f32
    %51 = vector.broadcast %cst_17 : f32 to vector<6x16xf32>
    %52 = arith.select %50, %51, %48 : vector<6x16xi1>, vector<6x16xf32>
    %cst_18 = arith.constant dense<0xFF800000> : vector<16xf32>
    %53 = vector.multi_reduction <maximumf>, %52, %cst_18 [0] : vector<6x16xf32> to vector<16xf32>
    %54 = vector.shape_cast %53 : vector<16xf32> to vector<1x16xf32>
    %55 = vector.broadcast %54 : vector<1x16xf32> to vector<6x16xf32>
    %56 = arith.subf %52, %55 : vector<6x16xf32>
    %57 = math.exp %56 : vector<6x16xf32>
    %cst_19 = arith.constant dense<0.000000e+00> : vector<16xf32>
    %58 = vector.multi_reduction <add>, %57, %cst_19 [0] : vector<6x16xf32> to vector<16xf32>
    %59 = vector.shape_cast %58 : vector<16xf32> to vector<1x16xf32>
    %cst_20 = arith.constant 1.000000e-30 : f32
    %60 = vector.broadcast %cst_20 : f32 to vector<1x16xf32>
    %61 = arith.maximumf %59, %60 : vector<1x16xf32>
    %62 = tpu.reciprocal %61 : vector<1x16xf32> -> vector<1x16xf32>
    %63 = vector.broadcast %62 : vector<1x16xf32> to vector<6x16xf32>
    %64 = arith.mulf %57, %63 : vector<6x16xf32>
    %c0_i32_21 = arith.constant 0 : i32
    %65 = vector.broadcast %c0_i32_21 : i32 to vector<6x16xi32>
    %66 = arith.cmpi eq, %45, %65 : vector<6x16xi32>
    %cst_22 = arith.constant 1.000000e+00 : f32
    %67 = vector.broadcast %cst_22 : f32 to vector<6x16xf32>
    %68 = arith.select %66, %67, %64 : vector<6x16xi1>, vector<6x16xf32>
    %69 = arith.mulf %68, %42 : vector<6x16xf32>
    %cst_23 = arith.constant 0.000000e+00 : f32
    %70 = vector.broadcast %cst_23 : f32 to vector<6x16xf32>
    %71 = arith.cmpf ogt, %69, %70 : vector<6x16xf32>
    %cst_24 = arith.constant 0.000000e+00 : f32
    %72 = vector.broadcast %cst_24 : f32 to vector<6x16xf32>
    %73 = arith.minimumf %69, %72 : vector<6x16xf32>
    %74 = math.exp %73 : vector<6x16xf32>
    %cst_25 = arith.constant 1.000000e+00 : f32
    %75 = vector.broadcast %cst_25 : f32 to vector<6x16xf32>
    %76 = arith.subf %74, %75 : vector<6x16xf32>
    %77 = arith.select %71, %69, %76 : vector<6x16xi1>, vector<6x16xf32>
    %c0_26 = arith.constant 0 : index
    %c0_27 = arith.constant 0 : index
    %c0_28 = arith.constant 0 : index
    %78 = vector.load %arg4[%c0_26, %c0_27, %c0_28] : memref<1x6x16xf32, #tpu.memory_space<vmem>>, vector<1x6x16xf32>
    %79 = vector.shape_cast %78 : vector<1x6x16xf32> to vector<6x16xf32>
    %80 = vector.shape_cast %77 : vector<6x16xf32> to vector<1x6x16xf32>
    tpu.vector_store %arg4[%c0_26, %c0_27, %c0_28], %80 {strides = array<i32>} : memref<1x6x16xf32, #tpu.memory_space<vmem>>, vector<1x6x16xf32>,
    return
  }
  func.func @transform_0(%arg0: i32) -> (i32, i32, i32) {
    %c0_i32 = arith.constant 0 : i32
    %c0_i32_0 = arith.constant 0 : i32
    %c0_i32_1 = arith.constant 0 : i32
    return %arg0, %c0_i32, %c0_i32_0 : i32, i32, i32
  }
  func.func @transform_1(%arg0: i32) -> (i32, i32) {
    %c0_i32 = arith.constant 0 : i32
    %c0_i32_0 = arith.constant 0 : i32
    %c0_i32_1 = arith.constant 0 : i32
    return %c0_i32, %c0_i32_0 : i32, i32
  }
  func.func @transform_2(%arg0: i32) -> (i32, i32) {
    %c0_i32 = arith.constant 0 : i32
    %c0_i32_0 = arith.constant 0 : i32
    %c0_i32_1 = arith.constant 0 : i32
    return %c0_i32, %c0_i32_0 : i32, i32
  }
  func.func @transform_3(%arg0: i32) -> (i32, i32, i32) {
    %c0_i32 = arith.constant 0 : i32
    %c0_i32_0 = arith.constant 0 : i32
    %c0_i32_1 = arith.constant 0 : i32
    return %arg0, %c0_i32, %c0_i32_0 : i32, i32, i32
  }
}

</mosaic_0001>

<bundles_post_ra>
// kernel: tpu_custom_call.1
= control target key start
LH: loop header
LB: loop body
LE: loop exit
PB: predicated region body
PF: predicated region fallthrough
CT: control target
= control target key end

     0   :  { %s707_s12 = smov 0   ;;  %s811_s0 = inlined_call_operand.vmem [shape: f32[2,6,16], index: 0, kind: input, shape index: {}]   ;;  %s812_s1 = inlined_call_operand.vmem [shape: f32[16,384], index: 1, kind: input, shape index: {}]   ;;  %s813_s2 = inlined_call_operand.vmem [shape: f32[128,48], index: 2, kind: input, shape index: {}]   ;;  %s814_s3 = inlined_call_operand.vmem [shape: f32[2,6,16], index: 3, kind: output, shape index: {}]  }
   0x1 LB: > { %s543_s13 = sadd.s32 4294967295, %s680_s12   ;;  %p547_p0 = scmp.ge.s32.totalorder %s680_s12, 1  ;;  %s680_s12 = sphi %s707_s12, %s13_s12  }
   0x2   : > { %p136_p1 = scmp.lt.s32.totalorder %s680_s12, 3 }
   0x4   : > { %p137_p2 = pnand %p547_p0, %p136_p1 }
   0x5   : > { %v168_v0 = vld [vmem:[%s812_s1 + $0x8] sm:$0xff] (!%p137_p2)  ;;  %v171_v1 = vld [vmem:[%s812_s1 + $0x20] sm:$0xff] (!%p137_p2)  ;;  %p158_p3 = scmp.lt.s32.totalorder (!%p137_p2), %s543_s13, 1  ;;  %v170_v4 = vld [vmem:[%s812_s1 + $0x18] sm:$0xff] (!%p137_p2)  ;;  %v682_v5 = vmov (!%p137_p2), 0.0   ;;  %v683_v9 = vmov (!%p137_p2), 0.0|0.0   ;;  %v318_v36 = vlaneseq (!%p137_p2) }
   0x6   : > { %140 = sbr.rel (%p137_p2) target bundleno = 836 (0x344), region = 32  ;;  %v167_v2 = vld [vmem:[%s812_s1] sm:$0xff] (!%p137_p2)  ;;  %v618_v3 = vpack.c.bf16 (!%p137_p2), %v171_v1, %v168_v0  ;;  %241 = vmatprep.mubr.f32.mxu1 (!%p137_p2), %v682_v5  ;;  %v169_v6 = vld [vmem:[%s812_s1 + $0x10] sm:$0xff] (!%p137_p2)  ;;  %v172_v7 = vld [vmem:[%s812_s1 + $0x28] sm:$0xff] (!%p137_p2)  ;;  %625 = vmatprep.subr.bf16.mxu0 (!%p137_p2), %v683_v9  ;;  %vm684_vm0 = vmmov (!%p137_p2), 0   ;;  %vm173_vm1 = vcmask (!%p137_p2), 130048  }
   0x7   : > { %v620_v8 = vpack.c.bf16 (!%p137_p2), %v170_v4, %v167_v2  ;;  %615 = vmatprep.mubr.msk.f32.mxu0 (!%p137_p2), %vm684_vm0, %v682_v5  ;;  %v623_v10 = vpack.c.bf16 (!%p137_p2), %v172_v7, %v169_v6  ;;  %v356_v12 = vld [vmem:[%s813_s2] sm:$0xff] (!%p137_p2)  ;;  %v357_v13 = vld [vmem:[%s813_s2 + $0x8] sm:$0xff] (!%p137_p2)  ;;  %v358_v14 = vld [vmem:[%s813_s2 + $0x10] sm:$0xff] (!%p137_p2)  ;;  %v789_v37 = vshrl.u32 (!%p137_p2), %v318_v36, 7  ;;  %vm327_vm3 = vcmask (!%p137_p2), 1045504   ;;  %s685_s11 = smov (!%p137_p2), 112  }
   0x8   : > { %619 = vmatprep.subr.bf16.mxu1 (!%p137_p2), %v618_v3  ;;  %v626_v15 = vpack.c.bf16 (!%p137_p2), %v357_v13, %v356_v12  ;;  %v359_v16 = vld [vmem:[%s813_s2 + $0x18] sm:$0xff] (!%p137_p2)  ;;  %v360_v18 = vld [vmem:[%s813_s2 + $0x20] sm:$0xff] (!%p137_p2)  ;;  %v361_v19 = vld [vmem:[%s813_s2 + $0x28] sm:$0xff] (!%p137_p2)  ;;  %s686_s14 = smov (!%p137_p2), 16   ;;  %vm452_vm5 = vcmask (!%p137_p2), 259200   ;;  %vm488_vm7 = vcmask (!%p137_p2), 128000  }
   0x9   : > { %621 = vmatpush1.bf16.msra.mxu1 (!%p137_p2), %v620_v8  ;;  %v629_v17 = vpack.c.bf16 (!%p137_p2), %v359_v16, %v358_v14  ;;  %v632_v20 = vpack.c.bf16 (!%p137_p2), %v361_v19, %v360_v18  ;;  %v362_v21 = vld [vmem:[%s813_s2 + $0x30] sm:$0xff] (!%p137_p2)  ;;  %v363_v22 = vld [vmem:[%s813_s2 + $0x38] sm:$0xff] (!%p137_p2)  ;;  %v364_v24 = vld [vmem:[%s813_s2 + $0x40] sm:$0xff] (!%p137_p2)  ;;  %v322_v38 = vsub.s32 (!%p137_p2), 0, %v789_v37  ;;  %vm325_vm2 = vcmp.eq.s32.totalorder (!%p137_p2), %v789_v37, 0 }
   0xa   : > { %622 = vmatprep.subr.bf16.mxu1 (!%p137_p2), %v683_v9  ;;  %627 = vmatpush3.bf16.msra.mxu0 (!%p137_p2), %v626_v15  ;;  %v635_v23 = vpack.c.bf16 (!%p137_p2), %v363_v22, %v362_v21  ;;  %v365_v25 = vld [vmem:[%s813_s2 + $0x48] sm:$0xff] (!%p137_p2)  ;;  %v366_v27 = vld [vmem:[%s813_s2 + $0x50] sm:$0xff] (!%p137_p2)  ;;  %v367_v28 = vld [vmem:[%s813_s2 + $0x58] sm:$0xff] (!%p137_p2) }
   0xb   : > { %628 = vmatprep.subr.bf16.mxu0 (!%p137_p2), %v683_v9  ;;  %v638_v26 = vpack.c.bf16 (!%p137_p2), %v365_v25, %v364_v24  ;;  %v641_v29 = vpack.c.bf16 (!%p137_p2), %v367_v28, %v366_v27  ;;  %v368_v30 = vld [vmem:[%s813_s2 + $0x60] sm:$0xff] (!%p137_p2)  ;;  %v369_v31 = vld [vmem:[%s813_s2 + $0x68] sm:$0xff] (!%p137_p2)  ;;  %v370_v33 = vld [vmem:[%s813_s2 + $0x70] sm:$0xff] (!%p137_p2) }
   0xc   : > { %v644_v32 = vpack.c.bf16 (!%p137_p2), %v369_v31, %v368_v30  ;;  %v371_v34 = vld [vmem:[%s813_s2 + $0x78] sm:$0xff] (!%p137_p2) }
   0xd   : > { %s816_s13 = smov (!%p158_p3, %s543_s13), 1  ;;  %v647_v35 = vpack.c.bf16 %v371_v34, %v370_v33 }
   0xe   : > { %s548_s26 = sshll.u32 %s816_s13, 3  ;;  %630 = vmatpush3.bf16.msra.mxu0 %v629_v17 }
   0xf   : > { %s161_s29 = scalar_lea.vmem %s811_s0, %s548_s26  ;;  %631 = vmatprep.subr.bf16.mxu0 %v683_v9  ;;  %s165_s17 = scalar_lea.vmem %s814_s3, %s548_s26 }
  0x10   : > { %v166_v11 = vld [vmem:[%s161_s29] sm:$0x3f] }
  0x11   : > { %550 = vmatmul.mubr.msk.f32.vlgmr.msra.gmra.mrb[0].mxu1 %vm173_vm1, %v166_v11 }
  0x12   : > { %624 = vmatpush3.bf16.msra.mxu1 %v623_v10  ;;  %580 = vmatprep.mubr.msk.f32.mxu1 %vm684_vm0, %v682_v5 }
  0x13   : > { %633 = vmatpush3.bf16.msra.mxu0 %v632_v20 }
  0x14   : > { %634 = vmatprep.subr.bf16.mxu0 %v683_v9 }
  0x15   : > { %581 = vmatmul.mubr.msk.f32.vlgmr.msra.gmra.mrb[2].mxu1 %vm173_vm1, %v166_v11 }
  0x17   : > { %636 = vmatpush3.bf16.msra.mxu0 %v635_v23 }
  0x18   : > { %637 = vmatprep.subr.bf16.mxu0 %v683_v9 }
  0x1b   : > { %639 = vmatpush3.bf16.msra.mxu0 %v638_v26 }
  0x1c   : > { %640 = vmatprep.subr.bf16.mxu0 %v683_v9 }
  0x1f   : > { %642 = vmatpush3.bf16.msra.mxu0 %v641_v29 }
  0x20   : > { %643 = vmatprep.subr.bf16.mxu0 %v683_v9 }
  0x23   : > { %645 = vmatpush3.bf16.msra.mxu0 %v644_v32 }
  0x24   : > { %646 = vmatprep.subr.bf16.mxu0 %v683_v9 }
  0x27   : > { %648 = vmatpush3.bf16.msra.mxu0 %v647_v35 }
  0xe4   : > { %v243_v39 = vpop.f32.mrb[0].mxu1 }
  0xe5   : > { %v245_v40 = vpop.f32.mrb[1].mxu1 }
  0xe6   : > { %v323_v41 = vrot.slane %v245_v40, %v322_v38 }
  0xe8   : > { %v314_v42 = vpop.f32.mrb[2].mxu1 }
  0xe9   : > { %v324_v43 = vadd.f32 %v323_v41, %v314_v42  ;;  %v582_v44 = vpop.f32.mrb[3].mxu1 }
  0xeb   : > { %v326_v45 = vsel %vm325_vm2, -1e+30, %v324_v43 }
  0xec   : > { %v328_v46 = vsel %vm327_vm3, %v326_v45, -inf }
  0xed   : > { %v329_v47 = vrot.slane %v328_v46, 4 }
  0xef   : > { %v330_v48 = vmax.f32 %v328_v46, %v329_v47 }
  0xf1   : > { %v331_v49 = vrot.slane %v330_v48, 2 }
  0xf3   : > { %v332_v50 = vmax.f32 %v330_v48, %v331_v49 }
  0xf5   : > { %v333_v51 = vrot.slane %v332_v50, 1 }
  0xf7   : > { %v334_v52 = vmax.f32 %v332_v50, %v333_v51 }
  0xf9   : > { %v335_v53 = vsub.f32 %v326_v45, %v334_v52 }
  0xfb   : > { %v336_v54 = vmul.f32 1.442695, %v335_v53 }
  0xfd   : > { %662 = vpow2.f32 %v336_v54 }
 0x107   : > { %v663_v55 = vpop.eup %662 }
 0x108   : > { %v338_v56 = vsel %vm327_vm3, %v663_v55, 0.0 }
 0x109   : > { %v339_v57 = vrot.slane %v338_v56, 4 }
 0x10b   : > { %v340_v58 = vadd.f32 %v339_v57, %v338_v56 }
 0x10d   : > { %v341_v59 = vrot.slane %v340_v58, 2 }
 0x10f   : > { %v342_v60 = vadd.f32 %v341_v59, %v340_v58 }
 0x111   : > { %v343_v61 = vrot.slane %v342_v60, 1 }
 0x113   : > { %v344_v62 = vadd.f32 %v343_v61, %v342_v60 }
 0x115   : > { %v345_v63 = vmax.f32 %v344_v62, 1e-30 }
 0x117   : > { %664 = vrcp.f32 %v345_v63 }
 0x121   : > { %v665_v0 = vpop.eup %664 }
 0x122   : > { %v347_v1 = vmul.f32 %v665_v0, %v663_v55 }
 0x124   : > { %v348_v2 = vsel %vm325_vm2, 1.0, %v347_v1 }
 0x125   : > { %v349_v3 = vmul.f32 %v348_v2, %v243_v39 }
 0x127   : > { %v351_v4 = vmin.f32 %v349_v3, 0.0  ;;  %vm350_vm4 = vcmp.gt.f32.partialorder %v349_v3, 0.0 }
 0x129   : > { %v352_v5 = vmul.f32 1.442695, %v351_v4 }
 0x12b   : > { %666 = vpow2.f32 %v352_v5 }
 0x135   : > { %v667_v6 = vpop.eup %666 }
 0x136   : > { %v552_v7 = vadd.f32 -1.0, %v667_v6 }
 0x138   : > { %v355_v8 = vsel %vm350_vm4, %v349_v3, %v552_v7 }
 0x139   : > { %616 = vmatmul.mubr.f32.vlgmr.msra.gmra.mrb[0].mxu0 %v355_v8 }
 0x20c   : > { %v438_v9 = vpop.f32.mrb[0].mxu0 }
 0x20d   : > { %447 = vrot.lane.b32.xlu0 %v438_v9, %s685_s11  ;;  %v617_v10 = vpop.f32.mrb[1].mxu0  ;;  %v445_v11 = vrot.slane %v438_v9, %v322_v38 }
 0x211   : > { %474 = vrot.lane.b32.xlu0 %v438_v9, %s686_s14 }
 0x27f   : > { %v448_v12 = vpop.permute.xlu0 %447 }
 0x280   : > { %v450_v13 = vadd.f32 %v448_v12, %v445_v11 }
 0x282   : > { %v451_v14 = vsel %vm325_vm2, -1e+30, %v450_v13 }
 0x283   : > { %v453_v15 = vsel %vm452_vm5, %v451_v14, -inf  ;;  %v475_v35 = vpop.permute.xlu0 %474 }
 0x284   : > { %v454_v16 = vrot.slane %v453_v15, 4 }
 0x286   : > { %v455_v17 = vmax.f32 %v453_v15, %v454_v16 }
 0x288   : > { %v456_v18 = vrot.slane %v455_v17, 2 }
 0x28a   : > { %v457_v19 = vmax.f32 %v455_v17, %v456_v18 }
 0x28c   : > { %v458_v20 = vrot.slane %v457_v19, 1 }
 0x28e   : > { %v459_v21 = vmax.f32 %v457_v19, %v458_v20 }
 0x290   : > { %v460_v22 = vsub.f32 %v451_v14, %v459_v21 }
 0x292   : > { %v461_v23 = vmul.f32 1.442695, %v460_v22 }
 0x294   : > { %668 = vpow2.f32 %v461_v23 }
 0x29e   : > { %v669_v24 = vpop.eup %668 }
 0x29f   : > { %v463_v25 = vsel %vm452_vm5, %v669_v24, 0.0 }
 0x2a0   : > { %v464_v26 = vrot.slane %v463_v25, 4 }
 0x2a2   : > { %v465_v27 = vadd.f32 %v464_v26, %v463_v25 }
 0x2a4   : > { %v466_v28 = vrot.slane %v465_v27, 2 }
 0x2a6   : > { %v467_v29 = vadd.f32 %v466_v28, %v465_v27 }
 0x2a8   : > { %v468_v30 = vrot.slane %v467_v29, 1 }
 0x2aa   : > { %v469_v31 = vadd.f32 %v468_v30, %v467_v29 }
 0x2ac   : > { %v470_v32 = vmax.f32 %v469_v31, 1e-30 }
 0x2ae   : > { %670 = vrcp.f32 %v470_v32 }
 0x2b8   : > { %v671_v33 = vpop.eup %670 }
 0x2b9   : > { %v472_v34 = vmul.f32 %v671_v33, %v669_v24 }
 0x2bb   : > { %v473_v36 = vsel %vm325_vm2, 1.0, %v472_v34 }
 0x2bc   : > { %v477_v38 = vmul.f32 %v475_v35, %v473_v36 }
 0x2be   : > { %v479_v39 = vmin.f32 %v477_v38, 0.0  ;;  %vm478_vm6 = vcmp.gt.f32.partialorder %v477_v38, 0.0 }
 0x2c0   : > { %v480_v40 = vmul.f32 1.442695, %v479_v39 }
 0x2c2   : > { %672 = vpow2.f32 %v480_v40 }
 0x2cc   : > { %v673_v41 = vpop.eup %672 }
 0x2cd   : > { %v553_v42 = vadd.f32 -1.0, %v673_v41 }
 0x2cf   : > { %v483_v43 = vsel %vm478_vm6, %v477_v38, %v553_v42 }
 0x2d0   : > { %485 = vrot.lane.b32.xlu1 %v483_v43, %s685_s11 }
 0x342   : > { %v486_v44 = vpop.permute.xlu1 %485 }
 0x343   : > { %489 = vst.msk [vmem:[%s165_s17] sm:$0x3f] %vm488_vm7, %v486_v44 }
 0x344 PF: > { %s13_s12 = sadd.s32 1, %s680_s12  }
 0x345   : > { %p10_p4 = scmp.ge.s32.totalorder %s13_s12, 4  }
 0x347   :  { %12 = sbr.rel (!%p10_p4) target bundleno = 1 (0x1), region = 62 }

</bundles_post_ra>
